<compile_context>
chip_gen: v5e
topology: v5e:2x2
jax: 0.10.0
libtpu: 0.0.40
codegen_flags: <defaults>
</compile_context>

<pallas_src>
import functools

import jax
import jax.numpy as jnp
from jax.experimental import pallas as pl
from jax.experimental.pallas import tpu as pltpu

EPS = 1e-5


def _vmem_budget():
    """Generation-aware (vmem_limit_bytes, TM_MAX, TN_MAX)."""
    cap = None
    try:
        info = pltpu.get_tpu_info()
        cap = getattr(info, "vmem_capacity_bytes", None)
    except Exception:
        cap = None
    if cap is not None and cap >= 96 * 1024 * 1024:
        # v5e / v6e: 128 MiB physical VMEM -> big tiles, generous limit.
        return 64 * 1024 * 1024, 1024, 512
    # v7x (64 MiB physical) or unknown generation -> conservative.
    return 40 * 1024 * 1024, 512, 256


VMEM_LIMIT_BYTES, TM_MAX, TN_MAX = _vmem_budget()


# ----------------------------- small helpers ------------------------------- #

def _compiler_params():
    return pltpu.CompilerParams(
        dimension_semantics=("parallel", "parallel"),
        vmem_limit_bytes=VMEM_LIMIT_BYTES,
    )


def _cost(flops, bytes_accessed):
    return pl.CostEstimate(flops=int(flops), transcendentals=0,
                           bytes_accessed=int(bytes_accessed))


def _nbytes(*arrays):
    return sum(int(a.size) * a.dtype.itemsize for a in arrays)


def _tiles(m, n, tm_max=None, tn_max=None):
    tm_max = TM_MAX if tm_max is None else tm_max
    tn_max = TN_MAX if tn_max is None else tn_max
    tm = m if m <= tm_max else tm_max
    tn = n if n <= tn_max else tn_max
    return tm, tn


# ----------------------------- Pallas kernels ------------------------------ #

def _matmul_bias_relu_kernel(x_ref, w_ref, b_ref, o_ref):
    # out = relu(x @ w + b)   (BN scale already folded into w)
    acc = jnp.dot(x_ref[...], w_ref[...], preferred_element_type=jnp.float32)
    o_ref[...] = jnp.maximum(acc + b_ref[...], 0.0).astype(o_ref.dtype)


def _matmul_bias_residual_relu_kernel(x_ref, w_ref, b_ref, r_ref, o_ref):
    # out = relu(x @ w + b + residual)   (identity shortcut, residual in f32)
    acc = jnp.dot(x_ref[...], w_ref[...], preferred_element_type=jnp.float32)
    acc = acc + b_ref[...] + r_ref[...].astype(jnp.float32)
    o_ref[...] = jnp.maximum(acc, 0.0).astype(o_ref.dtype)


def _dual_matmul_bias_relu_kernel(x_ref, w_ref, b_ref, xs_ref, wsc_ref, bsc_ref, o_ref):
    # out = relu(x @ w3 + b3 + xs @ wsc + bsc)   (projection shortcut fused in)
    acc = jnp.dot(x_ref[...], w_ref[...], preferred_element_type=jnp.float32)
    acc = acc + jnp.dot(xs_ref[...], wsc_ref[...], preferred_element_type=jnp.float32)
    acc = acc + b_ref[...] + bsc_ref[...]
    o_ref[...] = jnp.maximum(acc, 0.0).astype(o_ref.dtype)


def _conv3x3_s1_kernel(x_ref, w_ref, b_ref, o_ref, xpad_ref, acc_ref):
    # 3x3 conv, stride 1, pad 1.  x_ref: (1, H, W, Cin) *unpadded*; the zero
    # padding is applied inside VMEM (xpad scratch), so no padded copy of the
    # activation ever touches HBM.  acc_ref: (H*W, tn) f32 VMEM accumulator.
    h, w, cin = x_ref.shape[1], x_ref.shape[2], x_ref.shape[3]
    xpad_ref[...] = jnp.zeros_like(xpad_ref)
    xpad_ref[pl.ds(1, h), pl.ds(1, w), :] = x_ref[0]
    acc_ref[...] = jnp.zeros_like(acc_ref)
    for kh in range(3):
        for kw in range(3):
            tap = xpad_ref[pl.ds(kh, h), pl.ds(kw, w), :]
            acc_ref[...] += jnp.dot(tap.reshape(h * w, cin), w_ref[kh * 3 + kw],
                                    preferred_element_type=jnp.float32)
    o_ref[0] = jnp.maximum(acc_ref[...] + b_ref[...], 0.0).astype(o_ref.dtype)


def _conv3x3_poly_kernel(xph_ref, w_ref, b_ref, o_ref, acc_ref, *,
                         stride, hph, ho, wo):
    # Strided 3x3 conv on the polyphase-decomposed padded activation.  Every
    # tap is a contiguous ref-level window (static offsets), accumulated into
    # an f32 VMEM scratch.
    s = stride
    cin = xph_ref.shape[-1]
    acc_ref[...] = jnp.zeros_like(acc_ref)
    for kh in range(3):
        for kw in range(3):
            pq = (kh % s) * s + (kw % s)          # polyphase plane index
            r0 = pq * hph + kh // s
            c0 = kw // s
            tap = xph_ref[0, pl.ds(r0, ho), pl.ds(c0, wo), :]
            acc_ref[...] += jnp.dot(tap.reshape(ho * wo, cin), w_ref[kh * 3 + kw],
                                    preferred_element_type=jnp.float32)
    o_ref[0] = jnp.maximum(acc_ref[...] + b_ref[...], 0.0).astype(o_ref.dtype)


# --------------------------- pallas_call wrappers --------------------------- #

def conv1x1_bn_relu(x2d, w, b, out_dtype):
    m, k = x2d.shape
    n = w.shape[1]
    tm, tn = _tiles(m, n)
    gm, gn = pl.cdiv(m, tm), pl.cdiv(n, tn)
    bytes_accessed = (_nbytes(x2d) * gn + _nbytes(w, b) * gm
                      + m * n * jnp.dtype(out_dtype).itemsize)
    return pl.pallas_call(
        _matmul_bias_relu_kernel,
        out_shape=jax.ShapeDtypeStruct((m, n), out_dtype),
        grid_spec=pltpu.PrefetchScalarGridSpec(
            num_scalar_prefetch=0,
            grid=(gm, gn),
            in_specs=[
                pl.BlockSpec((tm, k), lambda i, j: (i, 0)),
                pl.BlockSpec((k, tn), lambda i, j: (0, j)),
                pl.BlockSpec((1, tn), lambda i, j: (0, j)),
            ],
            out_specs=pl.BlockSpec((tm, tn), lambda i, j: (i, j)),
        ),
        compiler_params=_compiler_params(),
        cost_estimate=_cost(2 * m * k * n, bytes_accessed),
    )(x2d, w, b.reshape(1, n))


def conv1x1_bn_add_relu(h2d, w, b, res2d, out_dtype):
    m, k = h2d.shape
    n = w.shape[1]
    tm, tn = _tiles(m, n)
    gm, gn = pl.cdiv(m, tm), pl.cdiv(n, tn)
    bytes_accessed = (_nbytes(h2d) * gn + _nbytes(w, b) * gm + _nbytes(res2d)
                      + m * n * jnp.dtype(out_dtype).itemsize)
    return pl.pallas_call(
        _matmul_bias_residual_relu_kernel,
        out_shape=jax.ShapeDtypeStruct((m, n), out_dtype),
        grid_spec=pltpu.PrefetchScalarGridSpec(
            num_scalar_prefetch=0,
            grid=(gm, gn),
            in_specs=[
                pl.BlockSpec((tm, k), lambda i, j: (i, 0)),
                pl.BlockSpec((k, tn), lambda i, j: (0, j)),
                pl.BlockSpec((1, tn), lambda i, j: (0, j)),
                pl.BlockSpec((tm, tn), lambda i, j: (i, j)),
            ],
            out_specs=pl.BlockSpec((tm, tn), lambda i, j: (i, j)),
        ),
        compiler_params=_compiler_params(),
        cost_estimate=_cost(2 * m * k * n, bytes_accessed),
    )(h2d, w, b.reshape(1, n), res2d)


def conv1x1_bn_dual_add_relu(h2d, w, b, xs2d, wsc, bsc, out_dtype):
    m, kh = h2d.shape
    n = w.shape[1]
    kx = xs2d.shape[1]
    tm, tn = _tiles(m, n)                       # full-size M tile (review fix)
    gm, gn = pl.cdiv(m, tm), pl.cdiv(n, tn)
    bytes_accessed = (_nbytes(h2d, xs2d) * gn + _nbytes(w, wsc, b, bsc) * gm
                      + m * n * jnp.dtype(out_dtype).itemsize)
    return pl.pallas_call(
        _dual_matmul_bias_relu_kernel,
        out_shape=jax.ShapeDtypeStruct((m, n), out_dtype),
        grid_spec=pltpu.PrefetchScalarGridSpec(
            num_scalar_prefetch=0,
            grid=(gm, gn),
            in_specs=[
                pl.BlockSpec((tm, kh), lambda i, j: (i, 0)),
                pl.BlockSpec((kh, tn), lambda i, j: (0, j)),
                pl.BlockSpec((1, tn), lambda i, j: (0, j)),
                pl.BlockSpec((tm, kx), lambda i, j: (i, 0)),
                pl.BlockSpec((kx, tn), lambda i, j: (0, j)),
                pl.BlockSpec((1, tn), lambda i, j: (0, j)),
            ],
            out_specs=pl.BlockSpec((tm, tn), lambda i, j: (i, j)),
        ),
        compiler_params=_compiler_params(),
        cost_estimate=_cost(2 * m * (kh + kx) * n, bytes_accessed),
    )(h2d, w, b.reshape(1, n), xs2d, wsc, bsc.reshape(1, n))


def _make_phases(x, stride):
    """Pad (H,W) by 1 and split into stride*stride polyphase grids stacked along H.

    Output (N, stride*stride*Hph, Wph, C); phase (p, q) occupies rows
    [(p*stride+q)*Hph, +Hph) and holds x_pad[:, p::stride, q::stride, :].
    Only used for stride > 1 (stride == 1 reads the activation directly)."""
    n, h, w, c = x.shape
    s = stride
    hp, wp = h + 2, w + 2
    hpp = -(-hp // s) * s
    wpp = -(-wp // s) * s
    xp = jnp.pad(x, ((0, 0), (1, 1 + hpp - hp), (1, 1 + wpp - wp), (0, 0)))
    hph, wph = hpp // s, wpp // s
    ph = xp.reshape(n, hph, s, wph, s, c)
    ph = jnp.transpose(ph, (0, 2, 4, 1, 3, 5))            # (n, p, q, hph, wph, c)
    return ph.reshape(n, s * s * hph, wph, c), hph, wph


def conv3x3_bn_relu(x, w9, b, stride, out_dtype):
    """3x3 conv (pad=1, stride) + folded-BN bias + ReLU.

    x: (N, H, W, Cin) NHWC.  w9: (9, Cin, Cout) with BN scale pre-folded,
    tap index = kh*3 + kw.  Returns (N, Ho*Wo, Cout)."""
    n, h, wd, cin = x.shape
    cout = w9.shape[-1]
    tn = cout if cout <= TN_MAX else TN_MAX
    gn = pl.cdiv(cout, tn)
    grid = (n, gn)

    if stride == 1:
        # Pad-free path: the zero padding lives only in a VMEM scratch.
        kern = _conv3x3_s1_kernel
        in_specs = [
            pl.BlockSpec((1, h, wd, cin), lambda bi, j: (bi, 0, 0, 0)),
            pl.BlockSpec((9, cin, tn), lambda bi, j: (0, 0, j)),
            pl.BlockSpec((1, tn), lambda bi, j: (0, j)),
        ]
        scratch = [pltpu.VMEM((h + 2, wd + 2, cin), x.dtype),
                   pltpu.VMEM((h * wd, tn), jnp.float32)]
        out_rows = h * wd
        operand = x
        in_bytes = _nbytes(x) * gn
    else:
        # TODO(synk): fuse the pad/polyphase prepass into conv1's output
        # BlockSpec (or strided in-kernel taps) to drop this extra HBM pass.
        ph, hph, wph = _make_phases(x, stride)
        ho = (h - 1) // stride + 1
        wo = (wd - 1) // stride + 1
        kern = functools.partial(_conv3x3_poly_kernel, stride=stride,
                                 hph=hph, ho=ho, wo=wo)
        in_specs = [
            pl.BlockSpec((1, stride * stride * hph, wph, cin),
                         lambda bi, j: (bi, 0, 0, 0)),
            pl.BlockSpec((9, cin, tn), lambda bi, j: (0, 0, j)),
            pl.BlockSpec((1, tn), lambda bi, j: (0, j)),
        ]
        scratch = [pltpu.VMEM((ho * wo, tn), jnp.float32)]
        out_rows = ho * wo
        operand = ph
        in_bytes = _nbytes(ph) * gn

    flops = 2 * n * out_rows * 9 * cin * cout
    bytes_accessed = (in_bytes + _nbytes(w9, b) * n
                      + n * out_rows * cout * jnp.dtype(out_dtype).itemsize)
    return pl.pallas_call(
        kern,
        out_shape=jax.ShapeDtypeStruct((n, out_rows, cout), out_dtype),
        grid_spec=pltpu.PrefetchScalarGridSpec(
            num_scalar_prefetch=0,
            grid=grid,
            in_specs=in_specs,
            out_specs=pl.BlockSpec((1, out_rows, tn), lambda bi, j: (bi, 0, j)),
            scratch_shapes=scratch,
        ),
        compiler_params=_compiler_params(),
        cost_estimate=_cost(flops, bytes_accessed),
    )(operand, w9, b.reshape(1, cout))


# ------------------------------ forward pass -------------------------------- #

def bottleblock_forward_nhwc(x, params, stride, *, compute_dtype=jnp.float32):
    n, h, w, cin = x.shape
    planes = params["w1"].shape[1]
    out_c = 4 * planes
    s = stride
    ho = (h - 1) // s + 1
    wo = (w - 1) // s + 1
    cd = compute_dtype
    xc = x.astype(cd)

    # conv1 (1x1) + bn1 + relu
    h1 = conv1x1_bn_relu(xc.reshape(n * h * w, cin), params["w1"].astype(cd),
                         params["b1"], out_dtype=cd).reshape(n, h, w, planes)

    # conv2 (3x3, stride, pad=1) + bn2 + relu -- in-kernel 9-tap accumulation
    h2 = conv3x3_bn_relu(h1, params["w2"].astype(cd), params["b2"], s,
                         out_dtype=cd).reshape(n * ho * wo, planes)

    # conv3 (1x1) + bn3 + shortcut + relu (shortcut conv fused into this kernel)
    if "wsc" in params:
        # TODO(synk): fold the strided shortcut gather into the fused kernel's
        # input DMA (BlockSpec / manual copy) to avoid this extra XLA slice.
        xs = xc[:, ::s, ::s, :].reshape(n * ho * wo, cin)
        out = conv1x1_bn_dual_add_relu(h2, params["w3"].astype(cd), params["b3"],
                                       xs, params["wsc"].astype(cd), params["bsc"],
                                       out_dtype=cd)
    else:
        assert s == 1 and cin == out_c, \
            "identity shortcut requires stride==1 and in_planes == 4*planes"
        res = x.reshape(n * h * w, cin)              # residual kept in f32
        out = conv1x1_bn_add_relu(h2, params["w3"].astype(cd), params["b3"], res,
                                  out_dtype=cd)
    return out.reshape(n, ho, wo, out_c)


def bottleblock_forward(x_nchw, params, stride, *, compute_dtype=jnp.float32):
    # TODO(synk): in a full ResNet keep activations NHWC end-to-end and hoist
    # these per-block NCHW<->NHWC transposes to the network boundary.
    x = jnp.transpose(x_nchw, (0, 2, 3, 1)).astype(jnp.float32)
    out = bottleblock_forward_nhwc(x, params, stride, compute_dtype=compute_dtype)
    return jnp.transpose(out, (0, 3, 1, 2))


# --------------------------- reference (plain JAX) -------------------------- #

def ref_forward(x_nchw, raw, stride):
    def conv(x, w, s):
        return jax.lax.conv_general_dilated(
            x, w, window_strides=(s, s),
            padding=[(w.shape[2] // 2, w.shape[2] // 2)] * 2,
            dimension_numbers=("NCHW", "OIHW", "NCHW"),
        )

    def bn(x, g, b, m, v):
        sc = g / jnp.sqrt(v + EPS)
        bi = b - m * sc
        return x * sc[None, :, None, None] + bi[None, :, None, None]

    x = x_nchw.astype(jnp.float32)
    o = jax.nn.relu(bn(conv(x, raw["w1"], 1), *raw["bn1"]))
    o = jax.nn.relu(bn(conv(o, raw["w2"], stride), *raw["bn2"]))
    o = bn(conv(o, raw["w3"], 1), *raw["bn3"])
    sc = bn(conv(x, raw["wsc"], stride), *raw["bnsc"]) if "wsc" in raw else x
    return jax.nn.relu(o + sc)


# ------------------------------- params ------------------------------------- #

def fold_bn(gamma, beta, mean, var):
    scale = gamma / jnp.sqrt(var + EPS)
    bias = beta - mean * scale
    return scale, bias


def make_params(key, in_planes, planes, stride):
    """Random PyTorch-layout weights plus the folded/packed Pallas params."""
    out_c = 4 * planes
    ks = jax.random.split(key, 8)

    def bn_params(k, c):
        k1, k2, k3, k4 = jax.random.split(k, 4)
        gamma = jax.random.uniform(k1, (c,), jnp.float32, 0.5, 1.5)
        beta = 0.1 * jax.random.normal(k2, (c,), jnp.float32)
        mean = 0.1 * jax.random.normal(k3, (c,), jnp.float32)
        var = jax.random.uniform(k4, (c,), jnp.float32, 0.5, 1.5)
        return gamma, beta, mean, var

    raw = {
        "w1": 0.2 * jax.random.normal(ks[0], (planes, in_planes, 1, 1), jnp.float32),
        "w2": 0.2 * jax.random.normal(ks[1], (planes, planes, 3, 3), jnp.float32),
        "w3": 0.2 * jax.random.normal(ks[2], (out_c, planes, 1, 1), jnp.float32),
        "bn1": bn_params(ks[3], planes),
        "bn2": bn_params(ks[4], planes),
        "bn3": bn_params(ks[5], out_c),
    }
    if stride != 1 or in_planes != out_c:
        raw["wsc"] = 0.2 * jax.random.normal(ks[6], (out_c, in_planes, 1, 1), jnp.float32)
        raw["bnsc"] = bn_params(ks[7], out_c)

    s1, b1 = fold_bn(*raw["bn1"])
    s2, b2 = fold_bn(*raw["bn2"])
    s3, b3 = fold_bn(*raw["bn3"])
    params = {
        # BN scale folded directly into the matmul weights; bias kept separate.
        "w1": jnp.transpose(raw["w1"][:, :, 0, 0], (1, 0)) * s1[None, :],
        "b1": b1,
        "w2": (jnp.transpose(raw["w2"], (2, 3, 1, 0)).reshape(9, planes, planes)
               * s2[None, None, :]),
        "b2": b2,
        "w3": jnp.transpose(raw["w3"][:, :, 0, 0], (1, 0)) * s3[None, :],
        "b3": b3,
    }
    if "wsc" in raw:
        ssc, bsc = fold_bn(*raw["bnsc"])
        params["wsc"] = jnp.transpose(raw["wsc"][:, :, 0, 0], (1, 0)) * ssc[None, :]
        params["bsc"] = bsc
    return params, raw


# -------------------------------- main --------------------------------------- #

if __name__ == "__main__":
    key = jax.random.PRNGKey(0)
    kx1, kp1, kx2, kp2 = jax.random.split(key, 4)

    # Case 1: projection shortcut (stride=2, channel expansion), f32 compute.
    in_planes, planes, stride = 4, 4, 2
    x1 = jax.random.normal(kx1, (2, in_planes, 16, 16), jnp.float32)  # NCHW
    params1, raw1 = make_params(kp1, in_planes, planes, stride)
    out1 = jax.block_until_ready(bottleblock_forward(x1, params1, stride))
    ref1 = jax.block_until_ready(ref_forward(x1, raw1, stride))
    assert out1.shape == ref1.shape == (2, 4 * planes, 8, 8)
    assert jnp.allclose(out1, ref1, atol=1e-3, rtol=1e-3), (
        float(jnp.max(jnp.abs(out1 - ref1))))

    # Case 2: identity shortcut (stride=1, in_planes == 4*planes), f32 compute.
    in_planes2, planes2, stride2 = 16, 4, 1
    x2 = jax.random.normal(kx2, (2, in_planes2, 16, 16), jnp.float32)
    params2, raw2 = make_params(kp2, in_planes2, planes2, stride2)
    out2 = jax.block_until_ready(bottleblock_forward(x2, params2, stride2))
    ref2 = jax.block_until_ready(ref_forward(x2, raw2, stride2))
    assert out2.shape == ref2.shape == (2, 16, 16, 16)
    assert jnp.allclose(out2, ref2, atol=1e-3, rtol=1e-3), (
        float(jnp.max(jnp.abs(out2 - ref2))))

    # Case 3: bf16 MXU inputs / f32 accumulation, bf16 output (fast path).
    out_bf = jax.block_until_ready(
        bottleblock_forward(x1, params1, stride, compute_dtype=jnp.bfloat16))
    assert out_bf.shape == ref1.shape
    assert jnp.allclose(out_bf.astype(jnp.float32), ref1, atol=0.15, rtol=0.15), (
        float(jnp.max(jnp.abs(out_bf.astype(jnp.float32) - ref1))))

    print("KERNEL_OK")
</pallas_src>

<mosaic_0001>
module attributes {stable_mosaic.version = 11 : i64} {
  func.func @_matmul_bias_relu_kernel(%arg0: i32, %arg1: i32, %arg2: memref<512x4xf32, #tpu.memory_space<vmem>>, %arg3: memref<4x4xf32, #tpu.memory_space<vmem>>, %arg4: memref<1x4xf32, #tpu.memory_space<vmem>>, %arg5: memref<512x4xf32, #tpu.memory_space<vmem>>) attributes {dimension_semantics = [#tpu.dimension_semantics<parallel>, #tpu.dimension_semantics<parallel>], iteration_bounds = array<i64: 1, 1>, scalar_prefetch = 0 : i64, scratch_operands = 0 : i64, tpu.core_type = #tpu.core_type<tc>, window_params = [{transform_indices = @transform_0, window_bounds = array<i64: 512, 4>}, {transform_indices = @transform_1, window_bounds = array<i64: 4, 4>}, {transform_indices = @transform_2, window_bounds = array<i64: 1, 4>}, {transform_indices = @transform_3, window_bounds = array<i64: 512, 4>}]} {
    %c0 = arith.constant 0 : index
    %c0_0 = arith.constant 0 : index
    %0 = vector.load %arg2[%c0, %c0_0] : memref<512x4xf32, #tpu.memory_space<vmem>>, vector<512x4xf32>
    %c0_1 = arith.constant 0 : index
    %c0_2 = arith.constant 0 : index
    %1 = vector.load %arg3[%c0_1, %c0_2] : memref<4x4xf32, #tpu.memory_space<vmem>>, vector<4x4xf32>
    %cst = arith.constant dense<0.000000e+00> : vector<512x4xf32>
    %2 = tpu.matmul %0, %1, %cst {dimension_numbers = #tpu.dot_dimension_numbers<[1], [0], [0], [1], [0, 0, 1, 1], [], []>} : vector<512x4xf32>, vector<4x4xf32>, vector<512x4xf32> -> vector<512x4xf32>
    %c0_3 = arith.constant 0 : index
    %c0_4 = arith.constant 0 : index
    %3 = vector.load %arg4[%c0_3, %c0_4] : memref<1x4xf32, #tpu.memory_space<vmem>>, vector<1x4xf32>
    %4 = vector.broadcast %3 : vector<1x4xf32> to vector<512x4xf32>
    %5 = arith.addf %2, %4 : vector<512x4xf32>
    %cst_5 = arith.constant 0.000000e+00 : f32
    %6 = vector.broadcast %cst_5 : f32 to vector<512x4xf32>
    %7 = arith.maximumf %5, %6 : vector<512x4xf32>
    %c0_6 = arith.constant 0 : index
    %c0_7 = arith.constant 0 : index
    %8 = vector.load %arg5[%c0_6, %c0_7] : memref<512x4xf32, #tpu.memory_space<vmem>>, vector<512x4xf32>
    tpu.vector_store %arg5[%c0_6, %c0_7], %7 {strides = array<i32>} : memref<512x4xf32, #tpu.memory_space<vmem>>, vector<512x4xf32>,
    return
  }
  func.func @transform_0(%arg0: i32, %arg1: i32) -> (i32, i32) {
    %c0_i32 = arith.constant 0 : i32
    %c0_i32_0 = arith.constant 0 : i32
    return %arg0, %c0_i32 : i32, i32
  }
  func.func @transform_1(%arg0: i32, %arg1: i32) -> (i32, i32) {
    %c0_i32 = arith.constant 0 : i32
    %c0_i32_0 = arith.constant 0 : i32
    return %c0_i32, %arg1 : i32, i32
  }
  func.func @transform_2(%arg0: i32, %arg1: i32) -> (i32, i32) {
    %c0_i32 = arith.constant 0 : i32
    %c0_i32_0 = arith.constant 0 : i32
    return %c0_i32, %arg1 : i32, i32
  }
  func.func @transform_3(%arg0: i32, %arg1: i32) -> (i32, i32) {
    %c0_i32 = arith.constant 0 : i32
    return %arg0, %arg1 : i32, i32
  }
}

</mosaic_0001>

<bundles_post_ra>
// kernel: tpu_custom_call.1
= control target key start
LH: loop header
LB: loop body
LE: loop exit
PB: predicated region body
PF: predicated region fallthrough
CT: control target
= control target key end

     0   :  { %vm276_vm0 = vcmask 1043456   ;;  %vm83_vm1 = vcmask 31744   ;;  %s1294_s1 = inlined_call_operand.vmem [shape: f32[4,4], index: 1, kind: input, shape index: {}]   ;;  %s1295_s0 = inlined_call_operand.vmem [shape: f32[512,4], index: 0, kind: input, shape index: {}]   ;;  %s1296_s2 = inlined_call_operand.vmem [shape: f32[1,4], index: 2, kind: input, shape index: {}]   ;;  %s1297_s3 = inlined_call_operand.vmem [shape: f32[512,4], index: 3, kind: output, shape index: {}]  }
   0x1   :  { %v78_v0 = vld [vmem:[%s1294_s1] sm:$0xf]  ;;  %v47_v5 = vld [vmem:[%s1295_s0 + $0x108] sm:$0xff]  ;;  %v48_v9 = vld [vmem:[%s1295_s0 + $0x110] sm:$0xff] }
   0x2   :  { %v46_v1 = vld [vmem:[%s1295_s0 + $0x100] sm:$0xff]  ;;  %687 = vmatpush.msk.msra.mxu2 %vm276_vm0, %v78_v0  ;;  %688 = vmatpush.msk.msra.mxu3 %vm276_vm0, %v78_v0  ;;  %v63_v6 = vld [vmem:[%s1295_s0 + $0x188] sm:$0xff]  ;;  %v64_v10 = vld [vmem:[%s1295_s0 + $0x190] sm:$0xff] }
   0x3   :  { %v62_v2 = vld [vmem:[%s1295_s0 + $0x180] sm:$0xff]  ;;  %654 = vmatmul.msk.f32.vlgmr.msra.gmra.mxu2 %vm83_vm1, %v46_v1  ;;  %621 = vmatpush.msk.msra.mxu0 %vm276_vm0, %v78_v0  ;;  %v15_v7 = vld [vmem:[%s1295_s0 + $0x8] sm:$0xff]  ;;  %v16_v11 = vld [vmem:[%s1295_s0 + $0x10] sm:$0xff] }
   0x4   :  { %v14_v3 = vld [vmem:[%s1295_s0] sm:$0xff]  ;;  %670 = vmatmul.msk.f32.vlgmr.msra.gmra.mxu3 %vm83_vm1, %v62_v2  ;;  %686 = vmatpush.msk.msra.mxu1 %vm276_vm0, %v78_v0  ;;  %v31_v8 = vld [vmem:[%s1295_s0 + $0x88] sm:$0xff]  ;;  %v32_v12 = vld [vmem:[%s1295_s0 + $0x90] sm:$0xff] }
   0x5   :  { %v30_v4 = vld [vmem:[%s1295_s0 + $0x80] sm:$0xff]  ;;  %622 = vmatmul.msk.f32.vlgmr.msra.gmra.mxu0 %vm83_vm1, %v14_v3  ;;  %v49_v13 = vld [vmem:[%s1295_s0 + $0x118] sm:$0xff]  ;;  %v51_v21 = vld [vmem:[%s1295_s0 + $0x128] sm:$0xff] }
   0x6   :  { %638 = vmatmul.msk.f32.vlgmr.msra.gmra.mxu1 %vm83_vm1, %v30_v4  ;;  %v65_v14 = vld [vmem:[%s1295_s0 + $0x198] sm:$0xff]  ;;  %v50_v17 = vld [vmem:[%s1295_s0 + $0x120] sm:$0xff]  ;;  %v67_v22 = vld [vmem:[%s1295_s0 + $0x1a8] sm:$0xff] }
   0x7   :  { %v17_v15 = vld [vmem:[%s1295_s0 + $0x18] sm:$0xff]  ;;  %v66_v18 = vld [vmem:[%s1295_s0 + $0x1a0] sm:$0xff]  ;;  %v19_v23 = vld [vmem:[%s1295_s0 + $0x28] sm:$0xff] }
   0x8   :  { %v33_v16 = vld [vmem:[%s1295_s0 + $0x98] sm:$0xff]  ;;  %v18_v19 = vld [vmem:[%s1295_s0 + $0x20] sm:$0xff]  ;;  %v35_v24 = vld [vmem:[%s1295_s0 + $0xa8] sm:$0xff] }
   0x9   :  { %v34_v20 = vld [vmem:[%s1295_s0 + $0xa0] sm:$0xff]  ;;  %v52_v25 = vld [vmem:[%s1295_s0 + $0x130] sm:$0xff]  ;;  %v53_v29 = vld [vmem:[%s1295_s0 + $0x138] sm:$0xff] }
   0xa   :  { %v68_v26 = vld [vmem:[%s1295_s0 + $0x1b0] sm:$0xff]  ;;  %v69_v30 = vld [vmem:[%s1295_s0 + $0x1b8] sm:$0xff]  ;;  %v54_v33 = vld [vmem:[%s1295_s0 + $0x140] sm:$0xff] }
   0xb   :  { %655 = vmatmul.msk.f32.gmra.mxu2 %vm83_vm1, %v47_v5  ;;  %v20_v27 = vld [vmem:[%s1295_s0 + $0x30] sm:$0xff]  ;;  %v21_v31 = vld [vmem:[%s1295_s0 + $0x38] sm:$0xff]  ;;  %v70_v34 = vld [vmem:[%s1295_s0 + $0x1c0] sm:$0xff] }
   0xc   :  { %671 = vmatmul.msk.f32.gmra.mxu3 %vm83_vm1, %v63_v6  ;;  %v36_v28 = vld [vmem:[%s1295_s0 + $0xb0] sm:$0xff]  ;;  %v37_v32 = vld [vmem:[%s1295_s0 + $0xb8] sm:$0xff]  ;;  %v22_v35 = vld [vmem:[%s1295_s0 + $0x40] sm:$0xff] }
   0xd   :  { %623 = vmatmul.msk.f32.gmra.mxu0 %vm83_vm1, %v15_v7  ;;  %v38_v36 = vld [vmem:[%s1295_s0 + $0xc0] sm:$0xff]  ;;  %v55_v37 = vld [vmem:[%s1295_s0 + $0x148] sm:$0xff]  ;;  %v56_v41 = vld [vmem:[%s1295_s0 + $0x150] sm:$0xff] }
   0xe   :  { %639 = vmatmul.msk.f32.gmra.mxu1 %vm83_vm1, %v31_v8  ;;  %v71_v38 = vld [vmem:[%s1295_s0 + $0x1c8] sm:$0xff]  ;;  %v72_v42 = vld [vmem:[%s1295_s0 + $0x1d0] sm:$0xff]  ;;  %v57_v45 = vld [vmem:[%s1295_s0 + $0x158] sm:$0xff] }
   0xf   :  { %v23_v39 = vld [vmem:[%s1295_s0 + $0x48] sm:$0xff]  ;;  %v24_v43 = vld [vmem:[%s1295_s0 + $0x50] sm:$0xff]  ;;  %v73_v46 = vld [vmem:[%s1295_s0 + $0x1d8] sm:$0xff] }
  0x10   :  { %v39_v40 = vld [vmem:[%s1295_s0 + $0xc8] sm:$0xff]  ;;  %v40_v44 = vld [vmem:[%s1295_s0 + $0xd0] sm:$0xff]  ;;  %v25_v47 = vld [vmem:[%s1295_s0 + $0x58] sm:$0xff] }
  0x11   :  { %v41_v48 = vld [vmem:[%s1295_s0 + $0xd8] sm:$0xff]  ;;  %v58_v49 = vld [vmem:[%s1295_s0 + $0x160] sm:$0xff]  ;;  %v59_v53 = vld [vmem:[%s1295_s0 + $0x168] sm:$0xff] }
  0x12   :  { %v74_v50 = vld [vmem:[%s1295_s0 + $0x1e0] sm:$0xff]  ;;  %v75_v54 = vld [vmem:[%s1295_s0 + $0x1e8] sm:$0xff]  ;;  %v60_v57 = vld [vmem:[%s1295_s0 + $0x170] sm:$0xff] }
  0x13   :  { %656 = vmatmul.msk.f32.gmra.mxu2 %vm83_vm1, %v48_v9  ;;  %v26_v51 = vld [vmem:[%s1295_s0 + $0x60] sm:$0xff]  ;;  %v27_v55 = vld [vmem:[%s1295_s0 + $0x68] sm:$0xff]  ;;  %v76_v58 = vld [vmem:[%s1295_s0 + $0x1f0] sm:$0xff] }
  0x14   :  { %672 = vmatmul.msk.f32.gmra.mxu3 %vm83_vm1, %v64_v10  ;;  %v42_v52 = vld [vmem:[%s1295_s0 + $0xe0] sm:$0xff]  ;;  %v43_v56 = vld [vmem:[%s1295_s0 + $0xe8] sm:$0xff]  ;;  %v28_v59 = vld [vmem:[%s1295_s0 + $0x70] sm:$0xff] }
  0x15   :  { %624 = vmatmul.msk.f32.gmra.mxu0 %vm83_vm1, %v16_v11  ;;  %v44_v60 = vld [vmem:[%s1295_s0 + $0xf0] sm:$0xff]  ;;  %v61_v61 = vld [vmem:[%s1295_s0 + $0x178] sm:$0xff]  ;;  %v972_v1 = vld [vmem:[%s1296_s2] ss:$0 sm:$0xff] }
  0x16   :  { %640 = vmatmul.msk.f32.gmra.mxu1 %vm83_vm1, %v32_v12  ;;  %v77_v62 = vld [vmem:[%s1295_s0 + $0x1f8] sm:$0xff] }
  0x17   :  { %v29_v63 = vld [vmem:[%s1295_s0 + $0x78] sm:$0xff] }
  0x18   :  { %v45_v0 = vld [vmem:[%s1295_s0 + $0xf8] sm:$0xff] }
  0x1b   :  { %657 = vmatmul.msk.f32.gmra.mxu2 %vm83_vm1, %v49_v13 }
  0x1c   :  { %673 = vmatmul.msk.f32.gmra.mxu3 %vm83_vm1, %v65_v14 }
  0x1d   :  { %625 = vmatmul.msk.f32.gmra.mxu0 %vm83_vm1, %v17_v15 }
  0x1e   :  { %641 = vmatmul.msk.f32.gmra.mxu1 %vm83_vm1, %v33_v16 }
  0x23   :  { %658 = vmatmul.msk.f32.gmra.mxu2 %vm83_vm1, %v50_v17 }
  0x24   :  { %674 = vmatmul.msk.f32.gmra.mxu3 %vm83_vm1, %v66_v18 }
  0x25   :  { %626 = vmatmul.msk.f32.gmra.mxu0 %vm83_vm1, %v18_v19 }
  0x26   :  { %642 = vmatmul.msk.f32.gmra.mxu1 %vm83_vm1, %v34_v20 }
  0x2b   :  { %659 = vmatmul.msk.f32.gmra.mxu2 %vm83_vm1, %v51_v21 }
  0x2c   :  { %675 = vmatmul.msk.f32.gmra.mxu3 %vm83_vm1, %v67_v22 }
  0x2d   :  { %627 = vmatmul.msk.f32.gmra.mxu0 %vm83_vm1, %v19_v23 }
  0x2e   :  { %643 = vmatmul.msk.f32.gmra.mxu1 %vm83_vm1, %v35_v24 }
  0x33   :  { %660 = vmatmul.msk.f32.gmra.mxu2 %vm83_vm1, %v52_v25 }
  0x34   :  { %676 = vmatmul.msk.f32.gmra.mxu3 %vm83_vm1, %v68_v26 }
  0x35   :  { %628 = vmatmul.msk.f32.gmra.mxu0 %vm83_vm1, %v20_v27 }
  0x36   :  { %644 = vmatmul.msk.f32.gmra.mxu1 %vm83_vm1, %v36_v28 }
  0x3b   :  { %661 = vmatmul.msk.f32.gmra.mxu2 %vm83_vm1, %v53_v29 }
  0x3c   :  { %677 = vmatmul.msk.f32.gmra.mxu3 %vm83_vm1, %v69_v30 }
  0x3d   :  { %629 = vmatmul.msk.f32.gmra.mxu0 %vm83_vm1, %v21_v31 }
  0x3e   :  { %645 = vmatmul.msk.f32.gmra.mxu1 %vm83_vm1, %v37_v32 }
  0x43   :  { %662 = vmatmul.msk.f32.gmra.mxu2 %vm83_vm1, %v54_v33 }
  0x44   :  { %678 = vmatmul.msk.f32.gmra.mxu3 %vm83_vm1, %v70_v34 }
  0x45   :  { %630 = vmatmul.msk.f32.gmra.mxu0 %vm83_vm1, %v22_v35 }
  0x46   :  { %646 = vmatmul.msk.f32.gmra.mxu1 %vm83_vm1, %v38_v36 }
  0x4b   :  { %663 = vmatmul.msk.f32.gmra.mxu2 %vm83_vm1, %v55_v37 }
  0x4c   :  { %679 = vmatmul.msk.f32.gmra.mxu3 %vm83_vm1, %v71_v38 }
  0x4d   :  { %631 = vmatmul.msk.f32.gmra.mxu0 %vm83_vm1, %v23_v39 }
  0x4e   :  { %647 = vmatmul.msk.f32.gmra.mxu1 %vm83_vm1, %v39_v40 }
  0x53   :  { %664 = vmatmul.msk.f32.gmra.mxu2 %vm83_vm1, %v56_v41 }
  0x54   :  { %680 = vmatmul.msk.f32.gmra.mxu3 %vm83_vm1, %v72_v42 }
  0x55   :  { %632 = vmatmul.msk.f32.gmra.mxu0 %vm83_vm1, %v24_v43 }
  0x56   :  { %648 = vmatmul.msk.f32.gmra.mxu1 %vm83_vm1, %v40_v44 }
  0x5b   :  { %665 = vmatmul.msk.f32.gmra.mxu2 %vm83_vm1, %v57_v45 }
  0x5c   :  { %681 = vmatmul.msk.f32.gmra.mxu3 %vm83_vm1, %v73_v46 }
  0x5d   :  { %633 = vmatmul.msk.f32.gmra.mxu0 %vm83_vm1, %v25_v47 }
  0x5e   :  { %649 = vmatmul.msk.f32.gmra.mxu1 %vm83_vm1, %v41_v48 }
  0x63   :  { %666 = vmatmul.msk.f32.gmra.mxu2 %vm83_vm1, %v58_v49 }
  0x64   :  { %682 = vmatmul.msk.f32.gmra.mxu3 %vm83_vm1, %v74_v50 }
  0x65   :  { %634 = vmatmul.msk.f32.gmra.mxu0 %vm83_vm1, %v26_v51 }
  0x66   :  { %650 = vmatmul.msk.f32.gmra.mxu1 %vm83_vm1, %v42_v52 }
  0x6b   :  { %667 = vmatmul.msk.f32.gmra.mxu2 %vm83_vm1, %v59_v53 }
  0x6c   :  { %683 = vmatmul.msk.f32.gmra.mxu3 %vm83_vm1, %v75_v54 }
  0x6d   :  { %635 = vmatmul.msk.f32.gmra.mxu0 %vm83_vm1, %v27_v55 }
  0x6e   :  { %651 = vmatmul.msk.f32.gmra.mxu1 %vm83_vm1, %v43_v56 }
  0x73   :  { %668 = vmatmul.msk.f32.gmra.mxu2 %vm83_vm1, %v60_v57 }
  0x74   :  { %684 = vmatmul.msk.f32.gmra.mxu3 %vm83_vm1, %v76_v58 }
  0x75   :  { %636 = vmatmul.msk.f32.gmra.mxu0 %vm83_vm1, %v28_v59 }
  0x76   :  { %652 = vmatmul.msk.f32.gmra.mxu1 %vm83_vm1, %v44_v60 }
  0x7b   :  { %669 = vmatmul.msk.f32.gmra.mxu2 %vm83_vm1, %v61_v61 }
  0x7c   :  { %685 = vmatmul.msk.f32.gmra.mxu3 %vm83_vm1, %v77_v62 }
  0x7d   :  { %637 = vmatmul.msk.f32.gmra.mxu0 %vm83_vm1, %v29_v63 }
  0x7e   :  { %653 = vmatmul.msk.f32.gmra.mxu1 %vm83_vm1, %v45_v0 }
  0x82   :  { %v297_v2 = vpop.f32.mrf.mxu0 }
  0x83   :  { %v345_v3 = vpop.f32.mrf.mxu1  ;;  %v298_v4 = vadd.f32 %v972_v1, %v297_v2 }
  0x84   :  { %v346_v5 = vadd.f32 %v972_v1, %v345_v3 }
  0x85   :  { %v489_v6 = vmax.f32 %v298_v4, 0.0 }
  0x86   :  { %v505_v7 = vmax.f32 %v346_v5, 0.0  ;;  %v393_v8 = vpop.f32.mrf.mxu2 }
  0x87   :  { %v441_v9 = vpop.f32.mrf.mxu3  ;;  %553 = vst.msk [vmem:[%s1297_s3] sm:$0xff] %vm83_vm1, %v489_v6  ;;  %v394_v10 = vadd.f32 %v972_v1, %v393_v8 }
  0x88   :  { %v442_v11 = vadd.f32 %v972_v1, %v441_v9  ;;  %569 = vst.msk [vmem:[%s1297_s3 + $0x80] sm:$0xff] %vm83_vm1, %v505_v7 }
  0x89   :  { %v521_v12 = vmax.f32 %v394_v10, 0.0 }
  0x8a   :  { %v537_v13 = vmax.f32 %v442_v11, 0.0  ;;  %v300_v14 = vpop.f32.mrf.mxu0 }
  0x8b   :  { %v348_v15 = vpop.f32.mrf.mxu1  ;;  %585 = vst.msk [vmem:[%s1297_s3 + $0x100] sm:$0xff] %vm83_vm1, %v521_v12  ;;  %v301_v16 = vadd.f32 %v972_v1, %v300_v14 }
  0x8c   :  { %v349_v17 = vadd.f32 %v972_v1, %v348_v15  ;;  %601 = vst.msk [vmem:[%s1297_s3 + $0x180] sm:$0xff] %vm83_vm1, %v537_v13 }
  0x8d   :  { %v490_v18 = vmax.f32 %v301_v16, 0.0 }
  0x8e   :  { %v506_v19 = vmax.f32 %v349_v17, 0.0  ;;  %v396_v20 = vpop.f32.mrf.mxu2 }
  0x8f   :  { %v444_v21 = vpop.f32.mrf.mxu3  ;;  %554 = vst.msk [vmem:[%s1297_s3 + $0x8] sm:$0xff] %vm83_vm1, %v490_v18  ;;  %v397_v22 = vadd.f32 %v972_v1, %v396_v20 }
  0x90   :  { %v445_v23 = vadd.f32 %v972_v1, %v444_v21  ;;  %570 = vst.msk [vmem:[%s1297_s3 + $0x88] sm:$0xff] %vm83_vm1, %v506_v19 }
  0x91   :  { %v522_v24 = vmax.f32 %v397_v22, 0.0 }
  0x92   :  { %v538_v25 = vmax.f32 %v445_v23, 0.0  ;;  %v303_v26 = vpop.f32.mrf.mxu0 }
  0x93   :  { %v351_v27 = vpop.f32.mrf.mxu1  ;;  %586 = vst.msk [vmem:[%s1297_s3 + $0x108] sm:$0xff] %vm83_vm1, %v522_v24  ;;  %v304_v28 = vadd.f32 %v972_v1, %v303_v26 }
  0x94   :  { %v352_v29 = vadd.f32 %v972_v1, %v351_v27  ;;  %602 = vst.msk [vmem:[%s1297_s3 + $0x188] sm:$0xff] %vm83_vm1, %v538_v25 }
  0x95   :  { %v491_v30 = vmax.f32 %v304_v28, 0.0 }
  0x96   :  { %v507_v31 = vmax.f32 %v352_v29, 0.0  ;;  %v399_v32 = vpop.f32.mrf.mxu2 }
  0x97   :  { %v447_v33 = vpop.f32.mrf.mxu3  ;;  %555 = vst.msk [vmem:[%s1297_s3 + $0x10] sm:$0xff] %vm83_vm1, %v491_v30  ;;  %v400_v34 = vadd.f32 %v972_v1, %v399_v32 }
  0x98   :  { %v448_v35 = vadd.f32 %v972_v1, %v447_v33  ;;  %571 = vst.msk [vmem:[%s1297_s3 + $0x90] sm:$0xff] %vm83_vm1, %v507_v31 }
  0x99   :  { %v523_v36 = vmax.f32 %v400_v34, 0.0 }
  0x9a   :  { %v539_v37 = vmax.f32 %v448_v35, 0.0  ;;  %v306_v38 = vpop.f32.mrf.mxu0 }
  0x9b   :  { %v354_v39 = vpop.f32.mrf.mxu1  ;;  %587 = vst.msk [vmem:[%s1297_s3 + $0x110] sm:$0xff] %vm83_vm1, %v523_v36  ;;  %v307_v40 = vadd.f32 %v972_v1, %v306_v38 }
  0x9c   :  { %v355_v41 = vadd.f32 %v972_v1, %v354_v39  ;;  %603 = vst.msk [vmem:[%s1297_s3 + $0x190] sm:$0xff] %vm83_vm1, %v539_v37 }
  0x9d   :  { %v492_v42 = vmax.f32 %v307_v40, 0.0 }
  0x9e   :  { %v508_v43 = vmax.f32 %v355_v41, 0.0  ;;  %v402_v44 = vpop.f32.mrf.mxu2 }
  0x9f   :  { %v450_v45 = vpop.f32.mrf.mxu3  ;;  %556 = vst.msk [vmem:[%s1297_s3 + $0x18] sm:$0xff] %vm83_vm1, %v492_v42  ;;  %v403_v46 = vadd.f32 %v972_v1, %v402_v44 }
  0xa0   :  { %v451_v47 = vadd.f32 %v972_v1, %v450_v45  ;;  %572 = vst.msk [vmem:[%s1297_s3 + $0x98] sm:$0xff] %vm83_vm1, %v508_v43 }
  0xa1   :  { %v524_v48 = vmax.f32 %v403_v46, 0.0 }
  0xa2   :  { %v540_v49 = vmax.f32 %v451_v47, 0.0  ;;  %v309_v50 = vpop.f32.mrf.mxu0 }
  0xa3   :  { %v357_v51 = vpop.f32.mrf.mxu1  ;;  %588 = vst.msk [vmem:[%s1297_s3 + $0x118] sm:$0xff] %vm83_vm1, %v524_v48  ;;  %v310_v52 = vadd.f32 %v972_v1, %v309_v50 }
  0xa4   :  { %v358_v53 = vadd.f32 %v972_v1, %v357_v51  ;;  %604 = vst.msk [vmem:[%s1297_s3 + $0x198] sm:$0xff] %vm83_vm1, %v540_v49 }
  0xa5   :  { %v493_v54 = vmax.f32 %v310_v52, 0.0 }
  0xa6   :  { %v509_v55 = vmax.f32 %v358_v53, 0.0  ;;  %v405_v56 = vpop.f32.mrf.mxu2 }
  0xa7   :  { %v453_v57 = vpop.f32.mrf.mxu3  ;;  %557 = vst.msk [vmem:[%s1297_s3 + $0x20] sm:$0xff] %vm83_vm1, %v493_v54  ;;  %v406_v58 = vadd.f32 %v972_v1, %v405_v56 }
  0xa8   :  { %v454_v59 = vadd.f32 %v972_v1, %v453_v57  ;;  %573 = vst.msk [vmem:[%s1297_s3 + $0xa0] sm:$0xff] %vm83_vm1, %v509_v55 }
  0xa9   :  { %v525_v60 = vmax.f32 %v406_v58, 0.0 }
  0xaa   :  { %v541_v61 = vmax.f32 %v454_v59, 0.0  ;;  %v312_v62 = vpop.f32.mrf.mxu0 }
  0xab   :  { %v360_v63 = vpop.f32.mrf.mxu1  ;;  %589 = vst.msk [vmem:[%s1297_s3 + $0x120] sm:$0xff] %vm83_vm1, %v525_v60  ;;  %v313_v0 = vadd.f32 %v972_v1, %v312_v62 }
  0xac   :  { %v361_v2 = vadd.f32 %v972_v1, %v360_v63  ;;  %605 = vst.msk [vmem:[%s1297_s3 + $0x1a0] sm:$0xff] %vm83_vm1, %v541_v61 }
  0xad   :  { %v494_v3 = vmax.f32 %v313_v0, 0.0 }
  0xae   :  { %v510_v4 = vmax.f32 %v361_v2, 0.0  ;;  %v408_v5 = vpop.f32.mrf.mxu2 }
  0xaf   :  { %v456_v6 = vpop.f32.mrf.mxu3  ;;  %558 = vst.msk [vmem:[%s1297_s3 + $0x28] sm:$0xff] %vm83_vm1, %v494_v3  ;;  %v409_v7 = vadd.f32 %v972_v1, %v408_v5 }
  0xb0   :  { %v457_v8 = vadd.f32 %v972_v1, %v456_v6  ;;  %574 = vst.msk [vmem:[%s1297_s3 + $0xa8] sm:$0xff] %vm83_vm1, %v510_v4 }
  0xb1   :  { %v526_v9 = vmax.f32 %v409_v7, 0.0 }
  0xb2   :  { %v542_v10 = vmax.f32 %v457_v8, 0.0  ;;  %v315_v11 = vpop.f32.mrf.mxu0 }
  0xb3   :  { %v363_v12 = vpop.f32.mrf.mxu1  ;;  %590 = vst.msk [vmem:[%s1297_s3 + $0x128] sm:$0xff] %vm83_vm1, %v526_v9  ;;  %v316_v13 = vadd.f32 %v972_v1, %v315_v11 }
  0xb4   :  { %v364_v14 = vadd.f32 %v972_v1, %v363_v12  ;;  %606 = vst.msk [vmem:[%s1297_s3 + $0x1a8] sm:$0xff] %vm83_vm1, %v542_v10 }
  0xb5   :  { %v495_v15 = vmax.f32 %v316_v13, 0.0 }
  0xb6   :  { %v511_v16 = vmax.f32 %v364_v14, 0.0  ;;  %v411_v17 = vpop.f32.mrf.mxu2 }
  0xb7   :  { %v459_v18 = vpop.f32.mrf.mxu3  ;;  %559 = vst.msk [vmem:[%s1297_s3 + $0x30] sm:$0xff] %vm83_vm1, %v495_v15  ;;  %v412_v19 = vadd.f32 %v972_v1, %v411_v17 }
  0xb8   :  { %v460_v20 = vadd.f32 %v972_v1, %v459_v18  ;;  %575 = vst.msk [vmem:[%s1297_s3 + $0xb0] sm:$0xff] %vm83_vm1, %v511_v16 }
  0xb9   :  { %v527_v21 = vmax.f32 %v412_v19, 0.0 }
  0xba   :  { %v543_v22 = vmax.f32 %v460_v20, 0.0  ;;  %v318_v23 = vpop.f32.mrf.mxu0 }
  0xbb   :  { %v366_v24 = vpop.f32.mrf.mxu1  ;;  %591 = vst.msk [vmem:[%s1297_s3 + $0x130] sm:$0xff] %vm83_vm1, %v527_v21  ;;  %v319_v25 = vadd.f32 %v972_v1, %v318_v23 }
  0xbc   :  { %v367_v26 = vadd.f32 %v972_v1, %v366_v24  ;;  %607 = vst.msk [vmem:[%s1297_s3 + $0x1b0] sm:$0xff] %vm83_vm1, %v543_v22 }
  0xbd   :  { %v496_v27 = vmax.f32 %v319_v25, 0.0 }
  0xbe   :  { %v512_v28 = vmax.f32 %v367_v26, 0.0  ;;  %v414_v29 = vpop.f32.mrf.mxu2 }
  0xbf   :  { %v462_v30 = vpop.f32.mrf.mxu3  ;;  %560 = vst.msk [vmem:[%s1297_s3 + $0x38] sm:$0xff] %vm83_vm1, %v496_v27  ;;  %v415_v31 = vadd.f32 %v972_v1, %v414_v29 }
  0xc0   :  { %v463_v32 = vadd.f32 %v972_v1, %v462_v30  ;;  %576 = vst.msk [vmem:[%s1297_s3 + $0xb8] sm:$0xff] %vm83_vm1, %v512_v28 }
  0xc1   :  { %v528_v33 = vmax.f32 %v415_v31, 0.0 }
  0xc2   :  { %v544_v34 = vmax.f32 %v463_v32, 0.0  ;;  %v321_v35 = vpop.f32.mrf.mxu0 }
  0xc3   :  { %v369_v36 = vpop.f32.mrf.mxu1  ;;  %592 = vst.msk [vmem:[%s1297_s3 + $0x138] sm:$0xff] %vm83_vm1, %v528_v33  ;;  %v322_v37 = vadd.f32 %v972_v1, %v321_v35 }
  0xc4   :  { %v370_v38 = vadd.f32 %v972_v1, %v369_v36  ;;  %608 = vst.msk [vmem:[%s1297_s3 + $0x1b8] sm:$0xff] %vm83_vm1, %v544_v34 }
  0xc5   :  { %v497_v39 = vmax.f32 %v322_v37, 0.0 }
  0xc6   :  { %v513_v40 = vmax.f32 %v370_v38, 0.0  ;;  %v417_v41 = vpop.f32.mrf.mxu2 }
  0xc7   :  { %v465_v42 = vpop.f32.mrf.mxu3  ;;  %561 = vst.msk [vmem:[%s1297_s3 + $0x40] sm:$0xff] %vm83_vm1, %v497_v39  ;;  %v418_v43 = vadd.f32 %v972_v1, %v417_v41 }
  0xc8   :  { %v466_v44 = vadd.f32 %v972_v1, %v465_v42  ;;  %577 = vst.msk [vmem:[%s1297_s3 + $0xc0] sm:$0xff] %vm83_vm1, %v513_v40 }
  0xc9   :  { %v529_v45 = vmax.f32 %v418_v43, 0.0 }
  0xca   :  { %v545_v46 = vmax.f32 %v466_v44, 0.0  ;;  %v324_v47 = vpop.f32.mrf.mxu0 }
  0xcb   :  { %v372_v48 = vpop.f32.mrf.mxu1  ;;  %593 = vst.msk [vmem:[%s1297_s3 + $0x140] sm:$0xff] %vm83_vm1, %v529_v45  ;;  %v325_v49 = vadd.f32 %v972_v1, %v324_v47 }
  0xcc   :  { %v373_v50 = vadd.f32 %v972_v1, %v372_v48  ;;  %609 = vst.msk [vmem:[%s1297_s3 + $0x1c0] sm:$0xff] %vm83_vm1, %v545_v46 }
  0xcd   :  { %v498_v51 = vmax.f32 %v325_v49, 0.0 }
  0xce   :  { %v514_v52 = vmax.f32 %v373_v50, 0.0  ;;  %v420_v53 = vpop.f32.mrf.mxu2 }
  0xcf   :  { %v468_v54 = vpop.f32.mrf.mxu3  ;;  %562 = vst.msk [vmem:[%s1297_s3 + $0x48] sm:$0xff] %vm83_vm1, %v498_v51  ;;  %v421_v55 = vadd.f32 %v972_v1, %v420_v53 }
  0xd0   :  { %v469_v56 = vadd.f32 %v972_v1, %v468_v54  ;;  %578 = vst.msk [vmem:[%s1297_s3 + $0xc8] sm:$0xff] %vm83_vm1, %v514_v52 }
  0xd1   :  { %v530_v57 = vmax.f32 %v421_v55, 0.0 }
  0xd2   :  { %v546_v58 = vmax.f32 %v469_v56, 0.0  ;;  %v327_v59 = vpop.f32.mrf.mxu0 }
  0xd3   :  { %v375_v60 = vpop.f32.mrf.mxu1  ;;  %594 = vst.msk [vmem:[%s1297_s3 + $0x148] sm:$0xff] %vm83_vm1, %v530_v57  ;;  %v328_v61 = vadd.f32 %v972_v1, %v327_v59 }
  0xd4   :  { %v376_v62 = vadd.f32 %v972_v1, %v375_v60  ;;  %610 = vst.msk [vmem:[%s1297_s3 + $0x1c8] sm:$0xff] %vm83_vm1, %v546_v58 }
  0xd5   :  { %v499_v63 = vmax.f32 %v328_v61, 0.0 }
  0xd6   :  { %v515_v0 = vmax.f32 %v376_v62, 0.0  ;;  %v423_v2 = vpop.f32.mrf.mxu2 }
  0xd7   :  { %v471_v3 = vpop.f32.mrf.mxu3  ;;  %563 = vst.msk [vmem:[%s1297_s3 + $0x50] sm:$0xff] %vm83_vm1, %v499_v63  ;;  %v424_v4 = vadd.f32 %v972_v1, %v423_v2 }
  0xd8   :  { %v472_v5 = vadd.f32 %v972_v1, %v471_v3  ;;  %579 = vst.msk [vmem:[%s1297_s3 + $0xd0] sm:$0xff] %vm83_vm1, %v515_v0 }
  0xd9   :  { %v531_v6 = vmax.f32 %v424_v4, 0.0 }
  0xda   :  { %v547_v7 = vmax.f32 %v472_v5, 0.0  ;;  %v330_v8 = vpop.f32.mrf.mxu0 }
  0xdb   :  { %v378_v9 = vpop.f32.mrf.mxu1  ;;  %595 = vst.msk [vmem:[%s1297_s3 + $0x150] sm:$0xff] %vm83_vm1, %v531_v6  ;;  %v331_v10 = vadd.f32 %v972_v1, %v330_v8 }
  0xdc   :  { %v379_v11 = vadd.f32 %v972_v1, %v378_v9  ;;  %611 = vst.msk [vmem:[%s1297_s3 + $0x1d0] sm:$0xff] %vm83_vm1, %v547_v7 }
  0xdd   :  { %v500_v12 = vmax.f32 %v331_v10, 0.0 }
  0xde   :  { %v516_v13 = vmax.f32 %v379_v11, 0.0  ;;  %v426_v14 = vpop.f32.mrf.mxu2 }
  0xdf   :  { %v474_v15 = vpop.f32.mrf.mxu3  ;;  %564 = vst.msk [vmem:[%s1297_s3 + $0x58] sm:$0xff] %vm83_vm1, %v500_v12  ;;  %v427_v16 = vadd.f32 %v972_v1, %v426_v14 }
  0xe0   :  { %v475_v17 = vadd.f32 %v972_v1, %v474_v15  ;;  %580 = vst.msk [vmem:[%s1297_s3 + $0xd8] sm:$0xff] %vm83_vm1, %v516_v13 }
  0xe1   :  { %v532_v18 = vmax.f32 %v427_v16, 0.0 }
  0xe2   :  { %v548_v19 = vmax.f32 %v475_v17, 0.0  ;;  %v333_v20 = vpop.f32.mrf.mxu0 }
  0xe3   :  { %v381_v21 = vpop.f32.mrf.mxu1  ;;  %596 = vst.msk [vmem:[%s1297_s3 + $0x158] sm:$0xff] %vm83_vm1, %v532_v18  ;;  %v334_v22 = vadd.f32 %v972_v1, %v333_v20 }
  0xe4   :  { %v382_v23 = vadd.f32 %v972_v1, %v381_v21  ;;  %612 = vst.msk [vmem:[%s1297_s3 + $0x1d8] sm:$0xff] %vm83_vm1, %v548_v19 }
  0xe5   :  { %v501_v24 = vmax.f32 %v334_v22, 0.0 }
  0xe6   :  { %v517_v25 = vmax.f32 %v382_v23, 0.0  ;;  %v429_v26 = vpop.f32.mrf.mxu2 }
  0xe7   :  { %v477_v27 = vpop.f32.mrf.mxu3  ;;  %565 = vst.msk [vmem:[%s1297_s3 + $0x60] sm:$0xff] %vm83_vm1, %v501_v24  ;;  %v430_v28 = vadd.f32 %v972_v1, %v429_v26 }
  0xe8   :  { %v478_v29 = vadd.f32 %v972_v1, %v477_v27  ;;  %581 = vst.msk [vmem:[%s1297_s3 + $0xe0] sm:$0xff] %vm83_vm1, %v517_v25 }
  0xe9   :  { %v533_v30 = vmax.f32 %v430_v28, 0.0 }
  0xea   :  { %v549_v31 = vmax.f32 %v478_v29, 0.0  ;;  %v336_v32 = vpop.f32.mrf.mxu0 }
  0xeb   :  { %v384_v33 = vpop.f32.mrf.mxu1  ;;  %597 = vst.msk [vmem:[%s1297_s3 + $0x160] sm:$0xff] %vm83_vm1, %v533_v30  ;;  %v337_v34 = vadd.f32 %v972_v1, %v336_v32 }
  0xec   :  { %v385_v35 = vadd.f32 %v972_v1, %v384_v33  ;;  %613 = vst.msk [vmem:[%s1297_s3 + $0x1e0] sm:$0xff] %vm83_vm1, %v549_v31 }
  0xed   :  { %v502_v36 = vmax.f32 %v337_v34, 0.0 }
  0xee   :  { %v518_v37 = vmax.f32 %v385_v35, 0.0  ;;  %v432_v38 = vpop.f32.mrf.mxu2 }
  0xef   :  { %v480_v39 = vpop.f32.mrf.mxu3  ;;  %566 = vst.msk [vmem:[%s1297_s3 + $0x68] sm:$0xff] %vm83_vm1, %v502_v36  ;;  %v433_v40 = vadd.f32 %v972_v1, %v432_v38 }
  0xf0   :  { %v481_v41 = vadd.f32 %v972_v1, %v480_v39  ;;  %582 = vst.msk [vmem:[%s1297_s3 + $0xe8] sm:$0xff] %vm83_vm1, %v518_v37 }
  0xf1   :  { %v534_v42 = vmax.f32 %v433_v40, 0.0 }
  0xf2   :  { %v550_v43 = vmax.f32 %v481_v41, 0.0  ;;  %v339_v44 = vpop.f32.mrf.mxu0 }
  0xf3   :  { %v387_v45 = vpop.f32.mrf.mxu1  ;;  %598 = vst.msk [vmem:[%s1297_s3 + $0x168] sm:$0xff] %vm83_vm1, %v534_v42  ;;  %v340_v46 = vadd.f32 %v972_v1, %v339_v44 }
  0xf4   :  { %v388_v47 = vadd.f32 %v972_v1, %v387_v45  ;;  %614 = vst.msk [vmem:[%s1297_s3 + $0x1e8] sm:$0xff] %vm83_vm1, %v550_v43 }
  0xf5   :  { %v503_v48 = vmax.f32 %v340_v46, 0.0 }
  0xf6   :  { %v519_v49 = vmax.f32 %v388_v47, 0.0  ;;  %v435_v50 = vpop.f32.mrf.mxu2 }
  0xf7   :  { %v483_v51 = vpop.f32.mrf.mxu3  ;;  %567 = vst.msk [vmem:[%s1297_s3 + $0x70] sm:$0xff] %vm83_vm1, %v503_v48  ;;  %v436_v52 = vadd.f32 %v972_v1, %v435_v50 }
  0xf8   :  { %v484_v53 = vadd.f32 %v972_v1, %v483_v51  ;;  %583 = vst.msk [vmem:[%s1297_s3 + $0xf0] sm:$0xff] %vm83_vm1, %v519_v49 }
  0xf9   :  { %v535_v54 = vmax.f32 %v436_v52, 0.0 }
  0xfa   :  { %v551_v55 = vmax.f32 %v484_v53, 0.0  ;;  %v342_v56 = vpop.f32.mrf.mxu0 }
  0xfb   :  { %v390_v57 = vpop.f32.mrf.mxu1  ;;  %599 = vst.msk [vmem:[%s1297_s3 + $0x170] sm:$0xff] %vm83_vm1, %v535_v54  ;;  %v343_v58 = vadd.f32 %v972_v1, %v342_v56 }
  0xfc   :  { %v391_v59 = vadd.f32 %v972_v1, %v390_v57  ;;  %615 = vst.msk [vmem:[%s1297_s3 + $0x1f0] sm:$0xff] %vm83_vm1, %v551_v55 }
  0xfd   :  { %v504_v60 = vmax.f32 %v343_v58, 0.0 }
  0xfe   :  { %v520_v61 = vmax.f32 %v391_v59, 0.0  ;;  %v438_v62 = vpop.f32.mrf.mxu2 }
  0xff   :  { %v486_v63 = vpop.f32.mrf.mxu3  ;;  %568 = vst.msk [vmem:[%s1297_s3 + $0x78] sm:$0xff] %vm83_vm1, %v504_v60  ;;  %v439_v0 = vadd.f32 %v972_v1, %v438_v62 }
 0x100   :  { %v487_v2 = vadd.f32 %v972_v1, %v486_v63  ;;  %584 = vst.msk [vmem:[%s1297_s3 + $0xf8] sm:$0xff] %vm83_vm1, %v520_v61 }
 0x101   :  { %v536_v3 = vmax.f32 %v439_v0, 0.0 }
 0x102   :  { %v552_v4 = vmax.f32 %v487_v2, 0.0 }
 0x103   :  { %600 = vst.msk [vmem:[%s1297_s3 + $0x178] sm:$0xff] %vm83_vm1, %v536_v3 }
 0x104   :  { %616 = vst.msk [vmem:[%s1297_s3 + $0x1f8] sm:$0xff] %vm83_vm1, %v552_v4 }

</bundles_post_ra>
